<compile_context>
chip_gen: v7x
topology: tpu7x:2x2x1
jax: 0.10.0
libtpu: 0.0.40
codegen_flags: <defaults>
</compile_context>

<pallas_src>
import functools

import jax
import jax.numpy as jnp
from jax.experimental import pallas as pl
from jax.experimental.pallas import tpu as pltpu

_SUBLANE = 8  # sublane (second-to-last dim) width of a vreg


def _round_up(n, m):
    return ((n + m - 1) // m) * m


def actor_kernel(x_ref, w1_ref, b1_ref, w2_ref, b2_ref, w3_ref, b3_ref, out_ref):
    """Fused 3-layer MLP on one batch tile: relu(fc1) -> relu(fc2) -> fc3 -> tanh.

    Activations / elementwise math stay in f32; inputs to each matmul are cast
    to the weight dtype (f32 or bf16) with f32 MXU accumulation.
    """
    # fc1 + ReLU
    x = x_ref[...].astype(w1_ref.dtype)
    h1 = jnp.dot(x, w1_ref[...], preferred_element_type=jnp.float32) + b1_ref[...]
    h1 = jnp.maximum(h1, 0.0)

    # fc2 + ReLU
    h2 = jnp.dot(h1.astype(w2_ref.dtype), w2_ref[...],
                 preferred_element_type=jnp.float32) + b2_ref[...]
    h2 = jnp.maximum(h2, 0.0)

    # fc3 + tanh
    h3 = jnp.dot(h2.astype(w3_ref.dtype), w3_ref[...],
                 preferred_element_type=jnp.float32) + b3_ref[...]
    out_ref[...] = jnp.tanh(h3)


def prepare_params(params, *, weights_dtype=None):
    """One-time parameter preparation (hoisted out of the per-call path).

    Biases become (1, features) float32; weights stay (in, out) and are
    optionally cast to `weights_dtype` (e.g. bf16 for the v6e/v7x MXU path).
    Call this once and reuse the result for every forward call.
    """
    prepared = {}
    for i in (1, 2, 3):
        w = jnp.asarray(params[f"w{i}"])
        if weights_dtype is not None:
            w = w.astype(weights_dtype)
        prepared[f"w{i}"] = w
        prepared[f"b{i}"] = jnp.asarray(params[f"b{i}"], jnp.float32).reshape(1, -1)
    return prepared


def _choose_batch_tile(batch, batch_tile):
    # At least two tiles whenever the batch allows it, so the "parallel" grid
    # axis can feed both v7x TensorCores; rows stay sublane(8)-aligned.
    half = _round_up(-(-batch // 2), _SUBLANE)
    tb = min(_round_up(batch_tile, _SUBLANE), half)
    return max(tb, _SUBLANE)


@functools.partial(jax.jit, static_argnames=("batch_tile",))
def actor_forward(x, params, *, batch_tile=256):
    """Actor forward pass.

    x: (B, input_dim) float.
    params: output of prepare_params(): w1 (in,h1), b1 (1,h1), w2 (h1,h2),
            b2 (1,h2), w3 (h2,out), b3 (1,out).  Weights f32 or bf16.
    Returns (B, output_dim) float32.
    """
    w1, b1 = params["w1"], params["b1"]
    w2, b2 = params["w2"], params["b2"]
    w3, b3 = params["w3"], params["b3"]

    B, d_in = x.shape
    h1_dim = w1.shape[1]
    h2_dim = w2.shape[1]
    d_out = w3.shape[1]

    tb = _choose_batch_tile(B, batch_tile)
    b_p = _round_up(B, tb)
    grid = (b_p // tb,)

    x_f32 = x.astype(jnp.float32)
    if b_p != B:  # only pad rows when the batch is not tile-aligned
        x_f32 = jnp.zeros((b_p, d_in), jnp.float32).at[:B].set(x_f32)

    def _nbytes(a):
        return a.size * a.dtype.itemsize

    weight_bytes = sum(_nbytes(a) for a in (w1, b1, w2, b2, w3, b3))
    x_tile_bytes = tb * d_in * 4
    out_tile_bytes = tb * d_out * 4
    act_bytes = tb * (h1_dim + h2_dim) * 4
    # Double-buffered operands + live activations, x2 safety margin + 2 MiB of
    # compiler scratch headroom; clamped to [4 MiB, 32 MiB].
    vmem_limit = min(
        32 * 1024 * 1024,
        max(4 * 1024 * 1024,
            2 * (2 * (x_tile_bytes + out_tile_bytes + weight_bytes) + act_bytes)
            + (2 << 20)))

    cost = pl.CostEstimate(
        flops=2 * B * (d_in * h1_dim + h1_dim * h2_dim + h2_dim * d_out),
        transcendentals=B * d_out,  # tanh
        bytes_accessed=B * d_in * 4 + weight_bytes + B * d_out * 4,
    )

    in_specs = [
        # x: streamed per batch tile (last dim == full array dim -> valid block).
        pl.BlockSpec((tb, d_in), lambda i: (i, 0)),
        # weights / biases: constant index_map -> resident across grid steps.
        pl.BlockSpec((d_in, h1_dim), lambda i: (0, 0)),
        pl.BlockSpec((1, h1_dim), lambda i: (0, 0)),
        pl.BlockSpec((h1_dim, h2_dim), lambda i: (0, 0)),
        pl.BlockSpec((1, h2_dim), lambda i: (0, 0)),
        pl.BlockSpec((h2_dim, d_out), lambda i: (0, 0)),
        pl.BlockSpec((1, d_out), lambda i: (0, 0)),
    ]
    out_specs = pl.BlockSpec((tb, d_out), lambda i: (i, 0))

    out = pl.pallas_call(
        actor_kernel,
        grid=grid,
        in_specs=in_specs,
        out_specs=out_specs,
        out_shape=jax.ShapeDtypeStruct((b_p, d_out), jnp.float32),
        compiler_params=pltpu.CompilerParams(
            dimension_semantics=("parallel",),  # shard batch tiles across TCs
            vmem_limit_bytes=int(vmem_limit),
        ),
        cost_estimate=cost,
    )(x_f32, w1, b1, w2, b2, w3, b3)

    if b_p != B:
        out = out[:B]
    return out


def init_actor_params(key, input_dim, output_dim, hidden1_dim=256, hidden2_dim=512):
    """Matches PyTorch nn.Linear default init: U(-1/sqrt(fan_in), +1/sqrt(fan_in)).

    Weights stored as (in, out) == transpose of PyTorch's (out, in); biases (1, out).
    """
    def linear(k, fan_in, fan_out):
        kw, kb = jax.random.split(k)
        bound = 1.0 / jnp.sqrt(jnp.float32(fan_in))
        w = jax.random.uniform(kw, (fan_in, fan_out), jnp.float32, -bound, bound)
        b = jax.random.uniform(kb, (1, fan_out), jnp.float32, -bound, bound)
        return w, b

    k1, k2, k3 = jax.random.split(key, 3)
    w1, b1 = linear(k1, input_dim, hidden1_dim)
    w2, b2 = linear(k2, hidden1_dim, hidden2_dim)
    w3, b3 = linear(k3, hidden2_dim, output_dim)
    return {"w1": w1, "b1": b1, "w2": w2, "b2": b2, "w3": w3, "b3": b3}


def _reference(x, params):
    h = jnp.maximum(x @ params["w1"].astype(jnp.float32) + params["b1"], 0.0)
    h = jnp.maximum(h @ params["w2"].astype(jnp.float32) + params["b2"], 0.0)
    return jnp.tanh(h @ params["w3"].astype(jnp.float32) + params["b3"])


if __name__ == "__main__":
    input_dim, output_dim = 32, 16
    hidden1_dim, hidden2_dim = 256, 512
    batch = 8  # NOTE: batch >= 256 is the real throughput regime (2 tiles, 2 TCs).

    key = jax.random.PRNGKey(0)
    pkey, xkey = jax.random.split(key)

    raw_params = init_actor_params(pkey, input_dim, output_dim, hidden1_dim, hidden2_dim)
    x = jax.random.normal(xkey, (batch, input_dim), jnp.float32)

    # --- f32 weight path (exact vs reference) ---
    params = prepare_params(raw_params)          # one-time prep, reused per call
    out = actor_forward(x, params)
    jax.block_until_ready(out)

    ref = _reference(x, params)
    assert out.shape == (batch, output_dim)
    assert jnp.allclose(out, ref, atol=1e-5, rtol=1e-5)

    # --- bf16 weight path (v6e/v7x MXU fast path, f32 accumulation) ---
    params_bf16 = prepare_params(raw_params, weights_dtype=jnp.bfloat16)
    out_bf16 = actor_forward(x, params_bf16)
    jax.block_until_ready(out_bf16)
    assert out_bf16.shape == (batch, output_dim)
    assert jnp.allclose(out_bf16, ref, atol=3e-2, rtol=3e-2)

    print("KERNEL_OK")
</pallas_src>

<mosaic_0001>
module attributes {stable_mosaic.version = 11 : i64} {
  func.func @actor_kernel(%arg0: i32, %arg1: memref<8x32xf32, #tpu.memory_space<vmem>>, %arg2: memref<32x256xf32, #tpu.memory_space<vmem>>, %arg3: memref<1x256xf32, #tpu.memory_space<vmem>>, %arg4: memref<256x512xf32, #tpu.memory_space<vmem>>, %arg5: memref<1x512xf32, #tpu.memory_space<vmem>>, %arg6: memref<512x16xf32, #tpu.memory_space<vmem>>, %arg7: memref<1x16xf32, #tpu.memory_space<vmem>>, %arg8: memref<8x16xf32, #tpu.memory_space<vmem>>) attributes {dimension_semantics = [#tpu.dimension_semantics<parallel>], iteration_bounds = array<i64: 1>, scalar_prefetch = 0 : i64, scratch_operands = 0 : i64, tpu.core_type = #tpu.core_type<tc>, window_params = [{transform_indices = @transform_0, window_bounds = array<i64: 8, 32>}, {pipeline_mode = #tpu.pipeline_mode<synchronous>, transform_indices = @transform_1, window_bounds = array<i64: 32, 256>}, {pipeline_mode = #tpu.pipeline_mode<synchronous>, transform_indices = @transform_2, window_bounds = array<i64: 1, 256>}, {pipeline_mode = #tpu.pipeline_mode<synchronous>, transform_indices = @transform_3, window_bounds = array<i64: 256, 512>}, {pipeline_mode = #tpu.pipeline_mode<synchronous>, transform_indices = @transform_4, window_bounds = array<i64: 1, 512>}, {pipeline_mode = #tpu.pipeline_mode<synchronous>, transform_indices = @transform_5, window_bounds = array<i64: 512, 16>}, {pipeline_mode = #tpu.pipeline_mode<synchronous>, transform_indices = @transform_6, window_bounds = array<i64: 1, 16>}, {transform_indices = @transform_7, window_bounds = array<i64: 8, 16>}]} {
    %c0 = arith.constant 0 : index
    %c0_0 = arith.constant 0 : index
    %0 = vector.load %arg1[%c0, %c0_0] : memref<8x32xf32, #tpu.memory_space<vmem>>, vector<8x32xf32>
    %c0_1 = arith.constant 0 : index
    %c0_2 = arith.constant 0 : index
    %1 = vector.load %arg2[%c0_1, %c0_2] : memref<32x256xf32, #tpu.memory_space<vmem>>, vector<32x256xf32>
    %cst = arith.constant dense<0.000000e+00> : vector<8x256xf32>
    %2 = tpu.matmul %0, %1, %cst {dimension_numbers = #tpu.dot_dimension_numbers<[1], [0], [0], [1], [0, 0, 1, 1], [], []>} : vector<8x32xf32>, vector<32x256xf32>, vector<8x256xf32> -> vector<8x256xf32>
    %c0_3 = arith.constant 0 : index
    %c0_4 = arith.constant 0 : index
    %3 = vector.load %arg3[%c0_3, %c0_4] : memref<1x256xf32, #tpu.memory_space<vmem>>, vector<1x256xf32>
    %4 = vector.broadcast %3 : vector<1x256xf32> to vector<8x256xf32>
    %5 = arith.addf %2, %4 : vector<8x256xf32>
    %cst_5 = arith.constant 0.000000e+00 : f32
    %6 = vector.broadcast %cst_5 : f32 to vector<8x256xf32>
    %7 = arith.maximumf %5, %6 : vector<8x256xf32>
    %c0_6 = arith.constant 0 : index
    %c0_7 = arith.constant 0 : index
    %8 = vector.load %arg4[%c0_6, %c0_7] : memref<256x512xf32, #tpu.memory_space<vmem>>, vector<256x512xf32>
    %cst_8 = arith.constant dense<0.000000e+00> : vector<8x512xf32>
    %9 = tpu.matmul %7, %8, %cst_8 {dimension_numbers = #tpu.dot_dimension_numbers<[1], [0], [0], [1], [0, 0, 1, 1], [], []>} : vector<8x256xf32>, vector<256x512xf32>, vector<8x512xf32> -> vector<8x512xf32>
    %c0_9 = arith.constant 0 : index
    %c0_10 = arith.constant 0 : index
    %10 = vector.load %arg5[%c0_9, %c0_10] : memref<1x512xf32, #tpu.memory_space<vmem>>, vector<1x512xf32>
    %11 = vector.broadcast %10 : vector<1x512xf32> to vector<8x512xf32>
    %12 = arith.addf %9, %11 : vector<8x512xf32>
    %cst_11 = arith.constant 0.000000e+00 : f32
    %13 = vector.broadcast %cst_11 : f32 to vector<8x512xf32>
    %14 = arith.maximumf %12, %13 : vector<8x512xf32>
    %c0_12 = arith.constant 0 : index
    %c0_13 = arith.constant 0 : index
    %15 = vector.load %arg6[%c0_12, %c0_13] : memref<512x16xf32, #tpu.memory_space<vmem>>, vector<512x16xf32>
    %cst_14 = arith.constant dense<0.000000e+00> : vector<8x16xf32>
    %16 = tpu.matmul %14, %15, %cst_14 {dimension_numbers = #tpu.dot_dimension_numbers<[1], [0], [0], [1], [0, 0, 1, 1], [], []>} : vector<8x512xf32>, vector<512x16xf32>, vector<8x16xf32> -> vector<8x16xf32>
    %c0_15 = arith.constant 0 : index
    %c0_16 = arith.constant 0 : index
    %17 = vector.load %arg7[%c0_15, %c0_16] : memref<1x16xf32, #tpu.memory_space<vmem>>, vector<1x16xf32>
    %18 = vector.broadcast %17 : vector<1x16xf32> to vector<8x16xf32>
    %19 = arith.addf %16, %18 : vector<8x16xf32>
    %20 = math.tanh %19 : vector<8x16xf32>
    %c0_17 = arith.constant 0 : index
    %c0_18 = arith.constant 0 : index
    %21 = vector.load %arg8[%c0_17, %c0_18] : memref<8x16xf32, #tpu.memory_space<vmem>>, vector<8x16xf32>
    tpu.vector_store %arg8[%c0_17, %c0_18], %20 {strides = array<i32>} : memref<8x16xf32, #tpu.memory_space<vmem>>, vector<8x16xf32>,
    return
  }
  func.func @transform_0(%arg0: i32) -> (i32, i32) {
    %c0_i32 = arith.constant 0 : i32
    %c0_i32_0 = arith.constant 0 : i32
    return %arg0, %c0_i32 : i32, i32
  }
  func.func @transform_1(%arg0: i32) -> (i32, i32) {
    %c0_i32 = arith.constant 0 : i32
    %c0_i32_0 = arith.constant 0 : i32
    %c0_i32_1 = arith.constant 0 : i32
    return %c0_i32, %c0_i32_0 : i32, i32
  }
  func.func @transform_2(%arg0: i32) -> (i32, i32) {
    %c0_i32 = arith.constant 0 : i32
    %c0_i32_0 = arith.constant 0 : i32
    %c0_i32_1 = arith.constant 0 : i32
    return %c0_i32, %c0_i32_0 : i32, i32
  }
  func.func @transform_3(%arg0: i32) -> (i32, i32) {
    %c0_i32 = arith.constant 0 : i32
    %c0_i32_0 = arith.constant 0 : i32
    %c0_i32_1 = arith.constant 0 : i32
    return %c0_i32, %c0_i32_0 : i32, i32
  }
  func.func @transform_4(%arg0: i32) -> (i32, i32) {
    %c0_i32 = arith.constant 0 : i32
    %c0_i32_0 = arith.constant 0 : i32
    %c0_i32_1 = arith.constant 0 : i32
    return %c0_i32, %c0_i32_0 : i32, i32
  }
  func.func @transform_5(%arg0: i32) -> (i32, i32) {
    %c0_i32 = arith.constant 0 : i32
    %c0_i32_0 = arith.constant 0 : i32
    %c0_i32_1 = arith.constant 0 : i32
    return %c0_i32, %c0_i32_0 : i32, i32
  }
  func.func @transform_6(%arg0: i32) -> (i32, i32) {
    %c0_i32 = arith.constant 0 : i32
    %c0_i32_0 = arith.constant 0 : i32
    %c0_i32_1 = arith.constant 0 : i32
    return %c0_i32, %c0_i32_0 : i32, i32
  }
  func.func @transform_7(%arg0: i32) -> (i32, i32) {
    %c0_i32 = arith.constant 0 : i32
    %c0_i32_0 = arith.constant 0 : i32
    return %arg0, %c0_i32 : i32, i32
  }
}

</mosaic_0001>

<bundles_post_ra>
// kernel: actor_forward.1
= control target key start
LH: loop header
LB: loop body
LE: loop exit
PB: predicated region body
PF: predicated region fallthrough
CT: control target
= control target key end

     0   :  { %12 = vsyncpa [#allocation3], 0  ;;  %s1302_s0 = inlined_call_operand.vmem [shape: f32[8,32], index: 0, kind: input, shape index: {}]   ;;  %s1303_s1 = inlined_call_operand.vmem [shape: f32[32,256], index: 1, kind: input, shape index: {}]   ;;  %s1304_s2 = inlined_call_operand.vmem [shape: f32[1,256], index: 2, kind: input, shape index: {}]   ;;  %s1305_s3 = inlined_call_operand.hbm [shape: f32[256,512], index: 3, kind: input, shape index: {}]   ;;  %s1306_s4 = inlined_call_operand.vmem [shape: f32[1,512], index: 4, kind: input, shape index: {}]   ;;  %s1307_s5 = inlined_call_operand.vmem [shape: f32[512,16], index: 5, kind: input, shape index: {}]   ;;  %s1308_s6 = inlined_call_operand.vmem [shape: f32[1,16], index: 6, kind: input, shape index: {}]   ;;  %s1309_s7 = inlined_call_operand.hbm [shape: f32[8,16], index: 7, kind: output, shape index: {}]  }
   0x1   :  { %13 = vsyncpa [#allocation4], 0  ;;  %s991_s24 = smov [#allocation2]   ;;  %s943_s28 = scalar_lea.hbm %s1305_s3, 16384 }
   0x2   :  { %s25_s25 = sshll.u32 %s991_s24, 4  ;;  %p944_p0 = scmp.ne.s32.totalorder %s1305_s3, %s943_s28  ;;  %s26_s25 = int_to_ptr.vmem [resolvable:$true] %s25_s25 }
   0x3   :  { %p947_p1 = scmp.lt.u32.totalorder %s943_s28, %s1305_s3 }
   0x5   :  { %p949_p2 = pnand %p947_p1, %p944_p0 }
   0x7   :  { %952 = shalt.err (!%p949_p2)
}
   0x8   :  { %s953_s10 = scalar_lea.vmem %s26_s25, 16384  ;;  %p958_p4 = scmp.lt.s32.totalorder %s26_s25, %s26_s25 }
   0x9   :  { %p954_p3 = scmp.ne.s32.totalorder %s26_s25, %s953_s10  ;;  %p959_p5 = scmp.lt.s32.totalorder %s953_s10, %s953_s10 }
   0xb   :  { %p960_p6 = por %p959_p5, %p958_p4 }
   0xd   :  { %p961_p7 = pnand %p960_p6, %p954_p3 }
   0xf   :  { %964 = shalt.err (!%p961_p7)
}
  0x10   :  { %s992_s11 = smov 512   ;;  %s993_s12 = smov 32  }
  0x11   :  { %31 = dma.hbm_to_vmem [thread:$0]  %s1305_s3, 16384, %s26_s25, [#allocation3], %s992_s11, %s992_s11, %s993_s12  }
  0x12   :  { %987 = dma.done.wait [#allocation3], 16384  }
  0x13   :  { %988 = vsyncadd [#allocation3], 4294950912  ;;  %v994_v0 = vmov 0.0   ;;  %v43_v1 = vld [vmem:[%s1303_s1 + $0x8] sm:$0xff]  ;;  %v45_v2 = vld [vmem:[%s1303_s1 + $0x18] sm:$0xff]  ;;  %vm62_vm0 = vcmask 261120  }
  0x14   :  { %130 = vmatprep.mubr.f32.mxu0 %v994_v0  ;;  %v42_v3 = vld [vmem:[%s1303_s1] sm:$0xff]  ;;  %v736_v4 = vpack.c.bf16 %v45_v2, %v43_v1  ;;  %v44_v5 = vld [vmem:[%s1303_s1 + $0x10] sm:$0xff]  ;;  %v47_v6 = vld [vmem:[%s1303_s1 + $0x28] sm:$0xff]  ;;  %s995_s29 = smov [#allocation5]   ;;  %vm647_vm1 = vcmask 130048  }
  0x15   :  { %v49_v7 = vld [vmem:[%s1303_s1 + $0x38] sm:$0xff]  ;;  %v738_v8 = vpack.c.bf16 %v44_v5, %v42_v3  ;;  %v46_v10 = vld [vmem:[%s1303_s1 + $0x20] sm:$0xff]  ;;  %v48_v11 = vld [vmem:[%s1303_s1 + $0x30] sm:$0xff]  ;;  %s655_s1 = sshll.u32 %s995_s29, 4  ;;  %s656_s1 = int_to_ptr.vmem [resolvable:$true] %s655_s1 }
  0x16   :  { %v740_v9 = vpack.c.bf16 %v49_v7, %v47_v6  ;;  %737 = vmatprep.subr.bf16.mxu0 %v736_v4  ;;  %v140_v12 = vld [vmem:[#allocation2 + $0x8] sm:$0xff]  ;;  %v142_v14 = vld [vmem:[#allocation2 + $0x18] sm:$0xff]  ;;  %v742_v15 = vpack.c.bf16 %v48_v11, %v46_v10  ;;  %v139_v18 = vld [vmem:[#allocation2] sm:$0xff]  ;;  %s965_s30 = scalar_lea.vmem %s656_s1, 128  ;;  %p970_p9 = scmp.lt.s32.totalorder %s656_s1, %s656_s1 }
  0x17   :  { %v144_v13 = vld [vmem:[#allocation2 + $0x28] sm:$0xff]  ;;  %739 = vmatpush1.bf16.msra.mxu0 %v738_v8  ;;  %v146_v17 = vld [vmem:[#allocation2 + $0x38] sm:$0xff]  ;;  %v143_v19 = vld [vmem:[#allocation2 + $0x20] sm:$0xff]  ;;  %p966_p8 = scmp.ne.s32.totalorder %s656_s1, %s965_s30  ;;  %p971_p10 = scmp.lt.s32.totalorder %s965_s30, %s965_s30 }
  0x18   :  { %v744_v16 = vpack.c.bf16 %v144_v13, %v140_v12  ;;  %741 = vmatprep.subr.bf16.mxu0 %v740_v9  ;;  %v808_v20 = vpack.c.bf16 %v146_v17, %v142_v14  ;;  %v746_v21 = vpack.c.bf16 %v143_v19, %v139_v18  ;;  %v141_v22 = vld [vmem:[#allocation2 + $0x10] sm:$0xff]  ;;  %v148_v24 = vld [vmem:[#allocation2 + $0x48] sm:$0xff]  ;;  %v150_v26 = vld [vmem:[#allocation2 + $0x58] sm:$0xff] }
  0x19   :  { %v145_v23 = vld [vmem:[#allocation2 + $0x30] sm:$0xff]  ;;  %v152_v25 = vld [vmem:[#allocation2 + $0x68] sm:$0xff]  ;;  %v154_v27 = vld [vmem:[#allocation2 + $0x78] sm:$0xff]  ;;  %p972_p11 = por %p971_p10, %p970_p9 }
  0x1a   :  { %745 = vmatprep.subr.bf16.mxu1 %v744_v16  ;;  %v748_v28 = vpack.c.bf16 %v152_v25, %v148_v24  ;;  %v147_v29 = vld [vmem:[#allocation2 + $0x40] sm:$0xff]  ;;  %v810_v32 = vpack.c.bf16 %v145_v23, %v141_v22  ;;  %v156_v34 = vld [vmem:[#allocation2 + $0x88] sm:$0xff]  ;;  %v812_v36 = vpack.c.bf16 %v154_v27, %v150_v26  ;;  %v149_v37 = vld [vmem:[#allocation2 + $0x50] sm:$0xff] }
  0x1b   :  { %747 = vmatpush1.bf16.msra.mxu1 %v746_v21  ;;  %v151_v30 = vld [vmem:[#allocation2 + $0x60] sm:$0xff]  ;;  %743 = vmatpush1.bf16.msra.mxu0 %v742_v15  ;;  %v160_v35 = vld [vmem:[#allocation2 + $0xa8] sm:$0xff]  ;;  %v153_v38 = vld [vmem:[#allocation2 + $0x70] sm:$0xff]  ;;  %p973_p12 = pnand %p972_p11, %p966_p8 }
  0x1c   :  { %v41_v31 = vld [vmem:[%s1302_s0] sm:$0xff]  ;;  %v750_v33 = vpack.c.bf16 %v151_v30, %v147_v29  ;;  %809 = vmatprep.subr.bf16.mxu0 %v808_v20  ;;  %749 = vmatprep.subr.bf16.mxu1 %v748_v28  ;;  %v752_v39 = vpack.c.bf16 %v160_v35, %v156_v34  ;;  %v158_v41 = vld [vmem:[#allocation2 + $0x98] sm:$0xff]  ;;  %v164_v45 = vld [vmem:[#allocation2 + $0xc8] sm:$0xff]  ;;  %v814_v47 = vpack.c.bf16 %v153_v38, %v149_v37 }
  0x1d   :  { %v155_v40 = vld [vmem:[#allocation2 + $0x80] sm:$0xff]  ;;  %v162_v42 = vld [vmem:[#allocation2 + $0xb8] sm:$0xff]  ;;  %v168_v46 = vld [vmem:[#allocation2 + $0xe8] sm:$0xff] }
  0x1e   :  { %v159_v43 = vld [vmem:[#allocation2 + $0xa0] sm:$0xff]  ;;  %664 = vmatmul.mubr.msk.f32.vlgmr.msra.gmra.mrb[0].mxu0 %vm62_vm0, %v41_v31  ;;  %v756_v48 = vpack.c.bf16 %v168_v46, %v164_v45  ;;  %v816_v51 = vpack.c.bf16 %v162_v42, %v158_v41  ;;  %v157_v52 = vld [vmem:[#allocation2 + $0x90] sm:$0xff]  ;;  %v172_v54 = vld [vmem:[#allocation2 + $0x108] sm:$0xff] }
  0x1f   :  { %751 = vmatpush1.bf16.msra.mxu1 %v750_v33  ;;  %v754_v44 = vpack.c.bf16 %v159_v43, %v155_v40  ;;  %811 = vmatpush1.bf16.msra.mxu0 %v810_v32  ;;  %v163_v49 = vld [vmem:[#allocation2 + $0xc0] sm:$0xff]  ;;  %v161_v53 = vld [vmem:[#allocation2 + $0xb0] sm:$0xff]  ;;  %v166_v55 = vld [vmem:[#allocation2 + $0xd8] sm:$0xff] }
  0x20   :  { %753 = vmatprep.subr.bf16.mxu1 %v752_v39  ;;  %v167_v50 = vld [vmem:[#allocation2 + $0xe0] sm:$0xff]  ;;  %813 = vmatprep.subr.bf16.mxu0 %v812_v36  ;;  %v170_v56 = vld [vmem:[#allocation2 + $0xf8] sm:$0xff]  ;;  %v176_v57 = vld [vmem:[#allocation2 + $0x128] sm:$0xff]  ;;  %v818_v59 = vpack.c.bf16 %v161_v53, %v157_v52 }
  0x21   :  { %v758_v58 = vpack.c.bf16 %v167_v50, %v163_v49  ;;  %v165_v60 = vld [vmem:[#allocation2 + $0xd0] sm:$0xff]  ;;  %v760_v61 = vpack.c.bf16 %v176_v57, %v172_v54  ;;  %v171_v62 = vld [vmem:[#allocation2 + $0x100] sm:$0xff]  ;;  %v820_v0 = vpack.c.bf16 %v170_v56, %v166_v55  ;;  %v180_v2 = vld [vmem:[#allocation2 + $0x148] sm:$0xff] }
  0x22   :  { %v175_v63 = vld [vmem:[#allocation2 + $0x120] sm:$0xff]  ;;  %v169_v1 = vld [vmem:[#allocation2 + $0xf0] sm:$0xff]  ;;  %v184_v3 = vld [vmem:[#allocation2 + $0x168] sm:$0xff] }
  0x23   :  { %755 = vmatpush1.bf16.msra.mxu1 %v754_v44  ;;  %815 = vmatpush1.bf16.msra.mxu0 %v814_v47  ;;  %v174_v4 = vld [vmem:[#allocation2 + $0x118] sm:$0xff]  ;;  %v762_v6 = vpack.c.bf16 %v175_v63, %v171_v62  ;;  %v822_v7 = vpack.c.bf16 %v169_v1, %v165_v60  ;;  %v173_v8 = vld [vmem:[#allocation2 + $0x110] sm:$0xff]  ;;  %v764_v9 = vpack.c.bf16 %v184_v3, %v180_v2  ;;  %v179_v10 = vld [vmem:[#allocation2 + $0x140] sm:$0xff] }
  0x24   :  { %757 = vmatprep.subr.bf16.mxu1 %v756_v48  ;;  %817 = vmatprep.subr.bf16.mxu0 %v816_v51  ;;  %v178_v5 = vld [vmem:[#allocation2 + $0x138] sm:$0xff]  ;;  %v183_v11 = vld [vmem:[#allocation2 + $0x160] sm:$0xff]  ;;  %v177_v13 = vld [vmem:[#allocation2 + $0x130] sm:$0xff] }
  0x25   :  { %v824_v12 = vpack.c.bf16 %v178_v5, %v174_v4  ;;  %v188_v14 = vld [vmem:[#allocation2 + $0x188] sm:$0xff]  ;;  %v182_v16 = vld [vmem:[#allocation2 + $0x158] sm:$0xff]  ;;  %v766_v18 = vpack.c.bf16 %v183_v11, %v179_v10  ;;  %v826_v19 = vpack.c.bf16 %v177_v13, %v173_v8  ;;  %v181_v20 = vld [vmem:[#allocation2 + $0x150] sm:$0xff] }
  0x26   :  { %v192_v15 = vld [vmem:[#allocation2 + $0x1a8] sm:$0xff]  ;;  %v186_v17 = vld [vmem:[#allocation2 + $0x178] sm:$0xff]  ;;  %v187_v22 = vld [vmem:[#allocation2 + $0x180] sm:$0xff] }
  0x27   :  { %759 = vmatpush1.bf16.msra.mxu1 %v758_v58  ;;  %819 = vmatpush1.bf16.msra.mxu0 %v818_v59  ;;  %v768_v21 = vpack.c.bf16 %v192_v15, %v188_v14  ;;  %v191_v23 = vld [vmem:[#allocation2 + $0x1a0] sm:$0xff]  ;;  %v828_v24 = vpack.c.bf16 %v186_v17, %v182_v16  ;;  %v185_v25 = vld [vmem:[#allocation2 + $0x170] sm:$0xff]  ;;  %v196_v26 = vld [vmem:[#allocation2 + $0x1c8] sm:$0xff] }
  0x28   :  { %761 = vmatprep.subr.bf16.mxu1 %v760_v61  ;;  %821 = vmatprep.subr.bf16.mxu0 %v820_v0  ;;  %v200_v27 = vld [vmem:[#allocation2 + $0x1e8] sm:$0xff]  ;;  %v190_v28 = vld [vmem:[#allocation2 + $0x198] sm:$0xff]  ;;  %v770_v30 = vpack.c.bf16 %v191_v23, %v187_v22  ;;  %v830_v31 = vpack.c.bf16 %v185_v25, %v181_v20  ;;  %v189_v32 = vld [vmem:[#allocation2 + $0x190] sm:$0xff] }
  0x29   :  { %v194_v29 = vld [vmem:[#allocation2 + $0x1b8] sm:$0xff]  ;;  %v772_v33 = vpack.c.bf16 %v200_v27, %v196_v26  ;;  %v195_v34 = vld [vmem:[#allocation2 + $0x1c0] sm:$0xff]  ;;  %v193_v37 = vld [vmem:[#allocation2 + $0x1b0] sm:$0xff] }
  0x2a   :  { %v199_v35 = vld [vmem:[#allocation2 + $0x1e0] sm:$0xff]  ;;  %v832_v36 = vpack.c.bf16 %v194_v29, %v190_v28  ;;  %v204_v38 = vld [vmem:[#allocation2 + $0x208] sm:$0xff]  ;;  %v198_v40 = vld [vmem:[#allocation2 + $0x1d8] sm:$0xff]  ;;  %v834_v43 = vpack.c.bf16 %v193_v37, %v189_v32 }
  0x2b   :  { %763 = vmatpush1.bf16.msra.mxu1 %v762_v6  ;;  %823 = vmatpush1.bf16.msra.mxu0 %v822_v7  ;;  %v208_v39 = vld [vmem:[#allocation2 + $0x228] sm:$0xff]  ;;  %v202_v41 = vld [vmem:[#allocation2 + $0x1f8] sm:$0xff]  ;;  %v774_v42 = vpack.c.bf16 %v199_v35, %v195_v34  ;;  %v197_v44 = vld [vmem:[#allocation2 + $0x1d0] sm:$0xff] }
  0x2c   :  { %765 = vmatprep.subr.bf16.mxu1 %v764_v9  ;;  %825 = vmatprep.subr.bf16.mxu0 %v824_v12  ;;  %v776_v45 = vpack.c.bf16 %v208_v39, %v204_v38  ;;  %v203_v46 = vld [vmem:[#allocation2 + $0x200] sm:$0xff]  ;;  %v836_v48 = vpack.c.bf16 %v202_v41, %v198_v40  ;;  %v201_v49 = vld [vmem:[#allocation2 + $0x1f0] sm:$0xff]  ;;  %v212_v50 = vld [vmem:[#allocation2 + $0x248] sm:$0xff] }
  0x2d   :  { %v207_v47 = vld [vmem:[#allocation2 + $0x220] sm:$0xff]  ;;  %v216_v51 = vld [vmem:[#allocation2 + $0x268] sm:$0xff]  ;;  %v206_v52 = vld [vmem:[#allocation2 + $0x218] sm:$0xff]  ;;  %v838_v55 = vpack.c.bf16 %v201_v49, %v197_v44 }
  0x2e   :  { %v210_v53 = vld [vmem:[#allocation2 + $0x238] sm:$0xff]  ;;  %v778_v54 = vpack.c.bf16 %v207_v47, %v203_v46  ;;  %v205_v56 = vld [vmem:[#allocation2 + $0x210] sm:$0xff]  ;;  %v780_v57 = vpack.c.bf16 %v216_v51, %v212_v50  ;;  %v211_v58 = vld [vmem:[#allocation2 + $0x240] sm:$0xff] }
  0x2f   :  { %767 = vmatpush1.bf16.msra.mxu1 %v766_v18  ;;  %827 = vmatpush1.bf16.msra.mxu0 %v826_v19  ;;  %v215_v59 = vld [vmem:[#allocation2 + $0x260] sm:$0xff]  ;;  %v840_v60 = vpack.c.bf16 %v210_v53, %v206_v52  ;;  %v209_v61 = vld [vmem:[#allocation2 + $0x230] sm:$0xff]  ;;  %v220_v62 = vld [vmem:[#allocation2 + $0x288] sm:$0xff] }
  0x30   :  { %769 = vmatprep.subr.bf16.mxu1 %v768_v21  ;;  %829 = vmatprep.subr.bf16.mxu0 %v828_v24  ;;  %v224_v63 = vld [vmem:[#allocation2 + $0x2a8] sm:$0xff]  ;;  %v214_v0 = vld [vmem:[#allocation2 + $0x258] sm:$0xff]  ;;  %v782_v2 = vpack.c.bf16 %v215_v59, %v211_v58  ;;  %v842_v3 = vpack.c.bf16 %v209_v61, %v205_v56  ;;  %v213_v4 = vld [vmem:[#allocation2 + $0x250] sm:$0xff] }
  0x31   :  { %v218_v1 = vld [vmem:[#allocation2 + $0x278] sm:$0xff]  ;;  %v784_v5 = vpack.c.bf16 %v224_v63, %v220_v62  ;;  %v219_v6 = vld [vmem:[#allocation2 + $0x280] sm:$0xff]  ;;  %v217_v9 = vld [vmem:[#allocation2 + $0x270] sm:$0xff] }
  0x32   :  { %v223_v7 = vld [vmem:[#allocation2 + $0x2a0] sm:$0xff]  ;;  %v844_v8 = vpack.c.bf16 %v218_v1, %v214_v0  ;;  %v228_v10 = vld [vmem:[#allocation2 + $0x2c8] sm:$0xff]  ;;  %v222_v12 = vld [vmem:[#allocation2 + $0x298] sm:$0xff]  ;;  %v846_v15 = vpack.c.bf16 %v217_v9, %v213_v4 }
  0x33   :  { %771 = vmatpush1.bf16.msra.mxu1 %v770_v30  ;;  %831 = vmatpush1.bf16.msra.mxu0 %v830_v31  ;;  %v232_v11 = vld [vmem:[#allocation2 + $0x2e8] sm:$0xff]  ;;  %v226_v13 = vld [vmem:[#allocation2 + $0x2b8] sm:$0xff]  ;;  %v786_v14 = vpack.c.bf16 %v223_v7, %v219_v6  ;;  %v221_v16 = vld [vmem:[#allocation2 + $0x290] sm:$0xff] }
  0x34   :  { %773 = vmatprep.subr.bf16.mxu1 %v772_v33  ;;  %833 = vmatprep.subr.bf16.mxu0 %v832_v36  ;;  %v788_v17 = vpack.c.bf16 %v232_v11, %v228_v10  ;;  %v227_v18 = vld [vmem:[#allocation2 + $0x2c0] sm:$0xff]  ;;  %v848_v20 = vpack.c.bf16 %v226_v13, %v222_v12  ;;  %v225_v21 = vld [vmem:[#allocation2 + $0x2b0] sm:$0xff]  ;;  %v236_v22 = vld [vmem:[#allocation2 + $0x308] sm:$0xff] }
  0x35   :  { %v231_v19 = vld [vmem:[#allocation2 + $0x2e0] sm:$0xff]  ;;  %v240_v23 = vld [vmem:[#allocation2 + $0x328] sm:$0xff]  ;;  %v230_v24 = vld [vmem:[#allocation2 + $0x2d8] sm:$0xff]  ;;  %v850_v27 = vpack.c.bf16 %v225_v21, %v221_v16 }
  0x36   :  { %v234_v25 = vld [vmem:[#allocation2 + $0x2f8] sm:$0xff]  ;;  %v790_v26 = vpack.c.bf16 %v231_v19, %v227_v18  ;;  %v229_v28 = vld [vmem:[#allocation2 + $0x2d0] sm:$0xff]  ;;  %v792_v29 = vpack.c.bf16 %v240_v23, %v236_v22  ;;  %v235_v30 = vld [vmem:[#allocation2 + $0x300] sm:$0xff] }
  0x37   :  { %775 = vmatpush1.bf16.msra.mxu1 %v774_v42  ;;  %835 = vmatpush1.bf16.msra.mxu0 %v834_v43  ;;  %v239_v31 = vld [vmem:[#allocation2 + $0x320] sm:$0xff]  ;;  %v852_v32 = vpack.c.bf16 %v234_v25, %v230_v24  ;;  %v233_v33 = vld [vmem:[#allocation2 + $0x2f0] sm:$0xff]  ;;  %v244_v34 = vld [vmem:[#allocation2 + $0x348] sm:$0xff] }
  0x38   :  { %777 = vmatprep.subr.bf16.mxu1 %v776_v45  ;;  %837 = vmatprep.subr.bf16.mxu0 %v836_v48  ;;  %v248_v35 = vld [vmem:[#allocation2 + $0x368] sm:$0xff]  ;;  %v238_v36 = vld [vmem:[#allocation2 + $0x318] sm:$0xff]  ;;  %v794_v38 = vpack.c.bf16 %v239_v31, %v235_v30  ;;  %v854_v39 = vpack.c.bf16 %v233_v33, %v229_v28  ;;  %v237_v40 = vld [vmem:[#allocation2 + $0x310] sm:$0xff] }
  0x39   :  { %v242_v37 = vld [vmem:[#allocation2 + $0x338] sm:$0xff]  ;;  %v796_v41 = vpack.c.bf16 %v248_v35, %v244_v34  ;;  %v243_v42 = vld [vmem:[#allocation2 + $0x340] sm:$0xff]  ;;  %v241_v45 = vld [vmem:[#allocation2 + $0x330] sm:$0xff] }
  0x3a   :  { %v247_v43 = vld [vmem:[#allocation2 + $0x360] sm:$0xff]  ;;  %v856_v44 = vpack.c.bf16 %v242_v37, %v238_v36  ;;  %v252_v46 = vld [vmem:[#allocation2 + $0x388] sm:$0xff]  ;;  %v246_v48 = vld [vmem:[#allocation2 + $0x358] sm:$0xff]  ;;  %v858_v51 = vpack.c.bf16 %v241_v45, %v237_v40 }
  0x3b   :  { %779 = vmatpush1.bf16.msra.mxu1 %v778_v54  ;;  %839 = vmatpush1.bf16.msra.mxu0 %v838_v55  ;;  %v256_v47 = vld [vmem:[#allocation2 + $0x3a8] sm:$0xff]  ;;  %v250_v49 = vld [vmem:[#allocation2 + $0x378] sm:$0xff]  ;;  %v798_v50 = vpack.c.bf16 %v247_v43, %v243_v42  ;;  %v245_v54 = vld [vmem:[#allocation2 + $0x350] sm:$0xff] }
  0x3c   :  { %781 = vmatprep.subr.bf16.mxu1 %v780_v57  ;;  %841 = vmatprep.subr.bf16.mxu0 %v840_v60  ;;  %v800_v52 = vpack.c.bf16 %v256_v47, %v252_v46  ;;  %v860_v53 = vpack.c.bf16 %v250_v49, %v246_v48  ;;  %v249_v55 = vld [vmem:[#allocation2 + $0x370] sm:$0xff]  ;;  %v254_v56 = vld [vmem:[#allocation2 + $0x398] sm:$0xff]  ;;  %v251_v60 = vld [vmem:[#allocation2 + $0x380] sm:$0xff] }
  0x3d   :  { %v258_v57 = vld [vmem:[#allocation2 + $0x3b8] sm:$0xff]  ;;  %v862_v58 = vpack.c.bf16 %v249_v55, %v245_v54  ;;  %v255_v61 = vld [vmem:[#allocation2 + $0x3a0] sm:$0xff]  ;;  %v253_v62 = vld [vmem:[#allocation2 + $0x390] sm:$0xff] }
  0x3e   :  { %v864_v59 = vpack.c.bf16 %v258_v57, %v254_v56  ;;  %v802_v63 = vpack.c.bf16 %v255_v61, %v251_v60  ;;  %v257_v0 = vld [vmem:[#allocation2 + $0x3b0] sm:$0xff]  ;;  %v262_v4 = vld [vmem:[#allocation2 + $0x3d8] sm:$0xff]  ;;  %v259_v7 = vld [vmem:[#allocation2 + $0x3c0] sm:$0xff] }
  0x3f   :  { %783 = vmatpush1.bf16.msra.mxu1 %v782_v2  ;;  %843 = vmatpush1.bf16.msra.mxu0 %v842_v3  ;;  %v866_v1 = vpack.c.bf16 %v257_v0, %v253_v62  ;;  %v260_v2 = vld [vmem:[#allocation2 + $0x3c8] sm:$0xff]  ;;  %v266_v6 = vld [vmem:[#allocation2 + $0x3f8] sm:$0xff]  ;;  %v261_v11 = vld [vmem:[#allocation2 + $0x3d0] sm:$0xff] }
  0x40   :  { %785 = vmatprep.subr.bf16.mxu1 %v784_v5  ;;  %845 = vmatprep.subr.bf16.mxu0 %v844_v8  ;;  %v264_v3 = vld [vmem:[#allocation2 + $0x3e8] sm:$0xff]  ;;  %v263_v8 = vld [vmem:[#allocation2 + $0x3e0] sm:$0xff]  ;;  %v868_v9 = vpack.c.bf16 %v266_v6, %v262_v4  ;;  %v265_v12 = vld [vmem:[#allocation2 + $0x3f0] sm:$0xff] }
  0x41   :  { %v804_v5 = vpack.c.bf16 %v264_v3, %v260_v2  ;;  %v806_v10 = vpack.c.bf16 %v263_v8, %v259_v7  ;;  %v870_v13 = vpack.c.bf16 %v265_v12, %v261_v11  ;;  %v483_v16 = vld [vmem:[%s1307_s5 + $0x180] sm:$0xff]  ;;  %v484_v18 = vld [vmem:[%s1307_s5 + $0x188] sm:$0xff]  ;;  %v453_v34 = vld [vmem:[%s1307_s5 + $0x90] sm:$0xff] }
  0x42   :  { %v904_v19 = vpack.c.bf16 %v484_v18, %v483_v16  ;;  %v50_v23 = vld [vmem:[%s1304_s2] sm:$0x3]  ;;  %v468_v33 = vld [vmem:[%s1307_s5 + $0x108] sm:$0xff]  ;;  %v454_v36 = vld [vmem:[%s1307_s5 + $0x98] sm:$0xff] }
  0x43   :  { %787 = vmatpush1.bf16.msra.mxu1 %v786_v14  ;;  %847 = vmatpush1.bf16.msra.mxu0 %v846_v15  ;;  %v451_v14 = vld [vmem:[%s1307_s5 + $0x80] sm:$0xff]  ;;  %v452_v15 = vld [vmem:[%s1307_s5 + $0x88] sm:$0xff]  ;;  %v485_v37 = vld [vmem:[%s1307_s5 + $0x190] sm:$0xff]  ;;  %v876_v45 = vpack.c.bf16 %v454_v36, %v453_v34 }
  0x44   :  { %789 = vmatprep.subr.bf16.mxu1 %v788_v17  ;;  %849 = vmatprep.subr.bf16.mxu0 %v848_v20  ;;  %v872_v17 = vpack.c.bf16 %v452_v15, %v451_v14  ;;  %v52_v20 = vlaneseq  ;;  %v435_v28 = vld [vmem:[%s1307_s5] sm:$0xff]  ;;  %v437_v42 = vld [vmem:[%s1307_s5 + $0x10] sm:$0xff]  ;;  %v438_v43 = vld [vmem:[%s1307_s5 + $0x18] sm:$0xff] }
  0x45   :  { %v469_v47 = vld [vmem:[%s1307_s5 + $0x110] sm:$0xff]  ;;  %v470_v48 = vld [vmem:[%s1307_s5 + $0x118] sm:$0xff]  ;;  %v455_v49 = vld [vmem:[%s1307_s5 + $0xa0] sm:$0xff] }
  0x46   :  { %v1087_v21 = vshrl.u32 %v52_v20, 7  ;;  %v910_v54 = vpack.c.bf16 %v470_v48, %v469_v47  ;;  %v439_v55 = vld [vmem:[%s1307_s5 + $0x20] sm:$0xff]  ;;  %v440_v56 = vld [vmem:[%s1307_s5 + $0x28] sm:$0xff]  ;;  %v457_v61 = vld [vmem:[%s1307_s5 + $0xb0] sm:$0xff] }
  0x47   :  { %791 = vmatpush1.bf16.msra.mxu1 %v790_v26  ;;  %851 = vmatpush1.bf16.msra.mxu0 %v850_v27  ;;  %v472_v60 = vld [vmem:[%s1307_s5 + $0x128] sm:$0xff]  ;;  %v458_v62 = vld [vmem:[%s1307_s5 + $0xb8] sm:$0xff]  ;;  %v441_v3 = vld [vmem:[%s1307_s5 + $0x30] sm:$0xff] }
  0x48   :  { %793 = vmatprep.subr.bf16.mxu1 %v792_v29  ;;  %853 = vmatprep.subr.bf16.mxu0 %v852_v32  ;;  %v54_v22 = vsub.s32 0, %v1087_v21  ;;  %v58_v24 = vsub.s32 1, %v1087_v21  ;;  %v436_v29 = vld [vmem:[%s1307_s5 + $0x8] sm:$0xff]  ;;  %v467_v32 = vld [vmem:[%s1307_s5 + $0x100] sm:$0xff]  ;;  %v490_v0 = vld [vmem:[%s1307_s5 + $0x1b8] sm:$0xff] }
  0x49   :  { %v874_v40 = vpack.c.bf16 %v436_v29, %v435_v28  ;;  %v442_v4 = vld [vmem:[%s1307_s5 + $0x38] sm:$0xff]  ;;  %v473_v7 = vld [vmem:[%s1307_s5 + $0x130] sm:$0xff]  ;;  %v491_v11 = vld [vmem:[%s1307_s5 + $0x1c0] sm:$0xff] }
  0x4a   :  { %v55_v25 = vrot.slane %v50_v23, %v54_v22  ;;  %v59_v26 = vrot.slane %v50_v23, %v58_v24  ;;  %v474_v8 = vld [vmem:[%s1307_s5 + $0x138] sm:$0xff]  ;;  %v492_v12 = vld [vmem:[%s1307_s5 + $0x1c8] sm:$0xff]  ;;  %v443_v15 = vld [vmem:[%s1307_s5 + $0x40] sm:$0xff] }
  0x4b   :  { %795 = vmatpush1.bf16.msra.mxu1 %v794_v38  ;;  %855 = vmatpush1.bf16.msra.mxu0 %v854_v39  ;;  %v486_v38 = vld [vmem:[%s1307_s5 + $0x198] sm:$0xff]  ;;  %v918_v14 = vpack.c.bf16 %v474_v8, %v473_v7  ;;  %v444_v16 = vld [vmem:[%s1307_s5 + $0x48] sm:$0xff]  ;;  %v920_v18 = vpack.c.bf16 %v492_v12, %v491_v11  ;;  %v461_v23 = vld [vmem:[%s1307_s5 + $0xd0] sm:$0xff] }
  0x4c   :  { %797 = vmatprep.subr.bf16.mxu1 %v796_v41  ;;  %857 = vmatprep.subr.bf16.mxu0 %v856_v44  ;;  %v906_v41 = vpack.c.bf16 %v468_v33, %v467_v32  ;;  %v908_v46 = vpack.c.bf16 %v486_v38, %v485_v37  ;;  %v476_v20 = vld [vmem:[%s1307_s5 + $0x148] sm:$0xff]  ;;  %v890_v28 = vpack.c.bf16 %v444_v16, %v443_v15  ;;  %v477_v34 = vld [vmem:[%s1307_s5 + $0x150] sm:$0xff]  ;;  %v463_v36 = vld [vmem:[%s1307_s5 + $0xe0] sm:$0xff] }
  0x4d   :  { %v464_v37 = vld [vmem:[%s1307_s5 + $0xe8] sm:$0xff]  ;;  %v495_v38 = vld [vmem:[%s1307_s5 + $0x1e0] sm:$0xff] }
  0x4e   :  { %v480_v48 = vld [vmem:[%s1307_s5 + $0x168] sm:$0xff] }
  0x4f   :  { %799 = vmatpush1.bf16.msra.mxu1 %v798_v50  ;;  %859 = vmatpush1.bf16.msra.mxu0 %v858_v51  ;;  %v456_v50 = vld [vmem:[%s1307_s5 + $0xa8] sm:$0xff]  ;;  %v487_v51 = vld [vmem:[%s1307_s5 + $0x1a0] sm:$0xff] }
  0x50   :  { %801 = vmatprep.subr.bf16.mxu1 %v800_v52  ;;  %861 = vmatprep.subr.bf16.mxu0 %v860_v53  ;;  %v488_v52 = vld [vmem:[%s1307_s5 + $0x1a8] sm:$0xff]  ;;  %v878_v53 = vpack.c.bf16 %v438_v43, %v437_v42  ;;  %v880_v57 = vpack.c.bf16 %v456_v50, %v455_v49  ;;  %v896_v42 = vpack.c.bf16 %v464_v37, %v463_v36  ;;  %v465_v50 = vld [vmem:[%s1307_s5 + $0xf0] sm:$0xff] }
  0x53   :  { %863 = vmatpush1.bf16.msra.mxu0 %v862_v58  ;;  %803 = vmatpush1.bf16.msra.mxu1 %v802_v63  ;;  %v912_v58 = vpack.c.bf16 %v488_v52, %v487_v51  ;;  %v489_v63 = vld [vmem:[%s1307_s5 + $0x1b0] sm:$0xff]  ;;  %v466_v51 = vld [vmem:[%s1307_s5 + $0xf8] sm:$0xff] }
  0x54   :  { %865 = vmatprep.subr.bf16.mxu0 %v864_v59  ;;  %805 = vmatprep.subr.bf16.mxu1 %v804_v5  ;;  %v471_v59 = vld [vmem:[%s1307_s5 + $0x120] sm:$0xff]  ;;  %v884_v5 = vpack.c.bf16 %v458_v62, %v457_v61  ;;  %v916_v6 = vpack.c.bf16 %v490_v0, %v489_v63  ;;  %v497_v52 = vld [vmem:[%s1307_s5 + $0x1f0] sm:$0xff]  ;;  %v279_v62 = vsub.s32 2, %v1087_v21  ;;  %v283_v0 = vsub.s32 3, %v1087_v21 }
  0x55   :  { %v914_v2 = vpack.c.bf16 %v472_v60, %v471_v59  ;;  %v481_v59 = vld [vmem:[%s1307_s5 + $0x170] sm:$0xff]  ;;  %v482_v60 = vld [vmem:[%s1307_s5 + $0x178] sm:$0xff]  ;;  %v267_v63 = vld [vmem:[%s1306_s4] sm:$0xf] }
  0x56   :  { %v934_v61 = vpack.c.bf16 %v482_v60, %v481_v59 }
  0x57   :  { %867 = vmatpush1.bf16.msra.mxu0 %v866_v1  ;;  %807 = vmatpush1.bf16.msra.mxu1 %v806_v10  ;;  %v882_v1 = vpack.c.bf16 %v440_v56, %v439_v55  ;;  %v460_v10 = vld [vmem:[%s1307_s5 + $0xc8] sm:$0xff]  ;;  %v449_v55 = vld [vmem:[%s1307_s5 + $0x70] sm:$0xff]  ;;  %v450_v56 = vld [vmem:[%s1307_s5 + $0x78] sm:$0xff] }
  0x58   :  { %869 = vmatprep.subr.bf16.mxu0 %v868_v9  ;;  %873 = vmatprep.subr.bf16.mxu1 %v872_v17  ;;  %v459_v9 = vld [vmem:[%s1307_s5 + $0xc0] sm:$0xff] }
  0x59   :  { %v888_v17 = vpack.c.bf16 %v460_v10, %v459_v9 }
  0x5b   :  { %871 = vmatpush1.bf16.msra.mxu0 %v870_v13  ;;  %v886_v13 = vpack.c.bf16 %v442_v4, %v441_v3  ;;  %v276_v3 = vrot.slane %v267_v63, %v58_v24  ;;  %v284_v4 = vrot.slane %v267_v63, %v283_v0  ;;  %v665_v24 = vld [vmem:[%s1308_s6] ss:$0 sm:$0xff] }
  0x5c   :  { %905 = vmatprep.subr.bf16.mxu0 %v904_v19  ;;  %v475_v19 = vld [vmem:[%s1307_s5 + $0x140] sm:$0xff] }
  0x5d   :  { %v922_v29 = vpack.c.bf16 %v476_v20, %v475_v19 }
  0xf1   :  { %v132_v27 = vpop.f32.mrb[0].mxu0 }
  0xf2   :  { %v133_v30 = vadd.f32 %v132_v27, %v55_v25  ;;  %v134_v31 = vpop.f32.mrb[1].mxu0  ;;  %v462_v25 = vld [vmem:[%s1307_s5 + $0xd8] sm:$0xff] }
  0xf3   :  { %v135_v35 = vadd.f32 %v134_v31, %v59_v26  ;;  %v493_v26 = vld [vmem:[%s1307_s5 + $0x1d0] sm:$0xff]  ;;  %v494_v27 = vld [vmem:[%s1307_s5 + $0x1d8] sm:$0xff]  ;;  %v892_v32 = vpack.c.bf16 %v462_v25, %v461_v23 }
  0xf4   :  { %v137_v44 = vmax.f32 %v133_v30, 0.0  ;;  %v445_v30 = vld [vmem:[%s1307_s5 + $0x50] sm:$0xff]  ;;  %v446_v31 = vld [vmem:[%s1307_s5 + $0x58] sm:$0xff]  ;;  %v924_v33 = vpack.c.bf16 %v494_v27, %v493_v26 }
  0xf5   :  { %v138_v39 = vmax.f32 %v135_v35, 0.0  ;;  %v478_v35 = vld [vmem:[%s1307_s5 + $0x158] sm:$0xff] }
  0xf7   :  { %353 = vmatprep.mubr.f32.mxu1 %v138_v39  ;;  %424 = vmatprep.mubr.f32.mxu0 %v138_v39  ;;  %v496_v39 = vld [vmem:[%s1307_s5 + $0x1e8] sm:$0xff] }
  0xf8   :  { %354 = vmatmul.mubr.f32.vlgmr.msra.gmra.mrb[0].mxu1 %v137_v44  ;;  %425 = vmatmul.mubr.f32.vlgmr.msra.gmra.mrb[2].mxu0 %v137_v44  ;;  %v928_v43 = vpack.c.bf16 %v496_v39, %v495_v38  ;;  %v447_v44 = vld [vmem:[%s1307_s5 + $0x60] sm:$0xff] }
  0xf9   :  { %875 = vmatpush3.bf16.msra.mxu1 %v874_v40  ;;  %907 = vmatpush3.bf16.msra.mxu0 %v906_v41  ;;  %v894_v40 = vpack.c.bf16 %v446_v31, %v445_v30  ;;  %v926_v41 = vpack.c.bf16 %v478_v35, %v477_v34 }
  0xfa   :  { %877 = vmatprep.subr.bf16.mxu1 %v876_v45  ;;  %909 = vmatprep.subr.bf16.mxu0 %v908_v46  ;;  %v448_v45 = vld [vmem:[%s1307_s5 + $0x68] sm:$0xff]  ;;  %v479_v46 = vld [vmem:[%s1307_s5 + $0x160] sm:$0xff] }
  0xfb   :  { %v898_v47 = vpack.c.bf16 %v448_v45, %v447_v44  ;;  %v930_v49 = vpack.c.bf16 %v480_v48, %v479_v46 }
  0xfd   :  { %879 = vmatpush3.bf16.msra.mxu1 %v878_v53  ;;  %911 = vmatpush3.bf16.msra.mxu0 %v910_v54  ;;  %v900_v53 = vpack.c.bf16 %v466_v51, %v465_v50  ;;  %v498_v54 = vld [vmem:[%s1307_s5 + $0x1f8] sm:$0xff] }
  0xfe   :  { %881 = vmatprep.subr.bf16.mxu1 %v880_v57  ;;  %913 = vmatprep.subr.bf16.mxu0 %v912_v58  ;;  %v932_v57 = vpack.c.bf16 %v498_v54, %v497_v52  ;;  %v902_v58 = vpack.c.bf16 %v450_v56, %v449_v55 }
 0x101   :  { %883 = vmatpush3.bf16.msra.mxu1 %v882_v1  ;;  %915 = vmatpush3.bf16.msra.mxu0 %v914_v2  ;;  %v272_v1 = vrot.slane %v267_v63, %v54_v22  ;;  %v280_v2 = vrot.slane %v267_v63, %v279_v62 }
 0x102   :  { %885 = vmatprep.subr.bf16.mxu1 %v884_v5  ;;  %917 = vmatprep.subr.bf16.mxu0 %v916_v6 }
 0x105   :  { %887 = vmatpush3.bf16.msra.mxu1 %v886_v13  ;;  %919 = vmatpush3.bf16.msra.mxu0 %v918_v14 }
 0x106   :  { %889 = vmatprep.subr.bf16.mxu1 %v888_v17  ;;  %921 = vmatprep.subr.bf16.mxu0 %v920_v18 }
 0x109   :  { %891 = vmatpush3.bf16.msra.mxu1 %v890_v28  ;;  %923 = vmatpush3.bf16.msra.mxu0 %v922_v29 }
 0x10a   :  { %893 = vmatprep.subr.bf16.mxu1 %v892_v32  ;;  %925 = vmatprep.subr.bf16.mxu0 %v924_v33 }
 0x10d   :  { %895 = vmatpush3.bf16.msra.mxu1 %v894_v40  ;;  %927 = vmatpush3.bf16.msra.mxu0 %v926_v41 }
 0x10e   :  { %897 = vmatprep.subr.bf16.mxu1 %v896_v42  ;;  %929 = vmatprep.subr.bf16.mxu0 %v928_v43 }
 0x111   :  { %899 = vmatpush3.bf16.msra.mxu1 %v898_v47  ;;  %931 = vmatpush3.bf16.msra.mxu0 %v930_v49 }
 0x112   :  { %901 = vmatprep.subr.bf16.mxu1 %v900_v53  ;;  %933 = vmatprep.subr.bf16.mxu0 %v932_v57 }
 0x115   :  { %903 = vmatpush3.bf16.msra.mxu1 %v902_v58  ;;  %935 = vmatpush3.bf16.msra.mxu0 %v934_v61 }
 0x1cb   :  { %v355_v5 = vpop.f32.mrb[0].mxu1  ;;  %v426_v6 = vpop.f32.mrb[2].mxu0 }
 0x1cc   :  { %v356_v7 = vadd.f32 %v355_v5, %v272_v1  ;;  %v427_v8 = vadd.f32 %v426_v6, %v280_v2  ;;  %v357_v9 = vpop.f32.mrb[1].mxu1  ;;  %v428_v10 = vpop.f32.mrb[3].mxu0 }
 0x1cd   :  { %v358_v11 = vadd.f32 %v357_v9, %v276_v3  ;;  %v429_v12 = vadd.f32 %v428_v10, %v284_v4 }
 0x1ce   :  { %v431_v15 = vmax.f32 %v356_v7, 0.0  ;;  %v433_v16 = vmax.f32 %v427_v8, 0.0 }
 0x1cf   :  { %v432_v13 = vmax.f32 %v358_v11, 0.0  ;;  %v434_v14 = vmax.f32 %v429_v12, 0.0 }
 0x1d1   :  { %570 = vmatprep.mubr.f32.mxu1 %v432_v13  ;;  %640 = vmatprep.mubr.f32.mxu0 %v434_v14 }
 0x1d2   :  { %571 = vmatmul.mubr.f32.vlgmr.msra.gmra.mrb[2].mxu1 %v431_v15  ;;  %641 = vmatmul.mubr.f32.vlgmr.msra.gmra.mrb[4].mxu0 %v433_v16 }
 0x2a5   :  { %v698_v22 = vpop.f32.mrb[2].mxu1  ;;  %v733_v21 = vpop.f32.mrb[4].mxu0 }
 0x2a6   :  { %v699_v17 = vpop.f32.mrb[3].mxu1  ;;  %v734_v18 = vpop.f32.mrb[5].mxu0 }
 0x2a7   :  { %v700_v19 = vadd.f32 %v699_v17, %v698_v22  ;;  %v735_v20 = vadd.f32 %v734_v18, %v733_v21 }
 0x2a9   :  { %v573_v23 = vadd.f32 %v700_v19, %v665_v24 }
 0x2ab   :  { %v643_v25 = vadd.f32 %v735_v20, %v573_v23 }
 0x2ad   :  { %941 = vtanh.f32 %v643_v25 }
 0x2b7   :  { %v942_v26 = vpop.eup %941 }
 0x2b8   :  { %648 = vst.msk [vmem:[#allocation5] sm:$0xff] %vm647_vm1, %v942_v26 }
 0x2b9   :  { %976 = shalt.err (!%p973_p12)
}
 0x2ba   :  { %s977_s8 = scalar_lea.hbm %s1309_s7, 128 }
 0x2bb   :  { %p978_p13 = scmp.ne.s32.totalorder %s1309_s7, %s977_s8  ;;  %p981_p0 = scmp.lt.u32.totalorder %s977_s8, %s1309_s7 }
 0x2bd   :  { %p983_p1 = pnand %p981_p0, %p978_p13 }
 0x2bf   :  { %986 = shalt.err (!%p983_p1)
}
 0x2c0   :  { %658 = dma.vmem_to_hbm [thread:$0]  %s656_s1, 128, %s1309_s7, [#allocation4]  }
 0x2c1   :  { %989 = dma.done.wait [#allocation4], 128  }
 0x2c2   :  { %990 = vsyncadd [#allocation4], 4294967168 }
 0x2c3   :  { %662 = vsyncpa [#allocation3], 1 }
 0x2c4   :  { %663 = vsyncpa [#allocation4], 1 }

</bundles_post_ra>
